<compile_context>
chip_gen: v5e
topology: v5e:2x2
jax: 0.10.0
libtpu: 0.0.40
codegen_flags: <defaults>
</compile_context>

<pallas_src>
from functools import partial

import jax
import jax.numpy as jnp
from jax.experimental import pallas as pl
from jax.experimental.pallas import tpu as pltpu


def _round_up(x: int, m: int) -> int:
    return ((x + m - 1) // m) * m


def _round_down(x: int, m: int) -> int:
    return (x // m) * m


def _lsce_kernel(x_ref, tgt_ref, loss_ref, m_acc, se_acc, sx_acc, xt_acc, *,
                 smoothing: float, num_classes: int, block_c: int):
    """Grid = (row tiles ["parallel"], class chunks ["arbitrary"]).

    Online logsumexp over the class chunks; all running state is (tm, 1) f32
    VMEM scratch.  When the grid has a single class chunk this degenerates to
    the plain single-pass computation.
    """
    k = pl.program_id(1)
    nk = pl.num_programs(1)

    @pl.when(k == 0)
    def _init():
        m_acc[...] = jnp.full(m_acc.shape, -jnp.inf, dtype=jnp.float32)
        se_acc[...] = jnp.zeros(se_acc.shape, dtype=jnp.float32)
        sx_acc[...] = jnp.zeros(sx_acc.shape, dtype=jnp.float32)
        xt_acc[...] = jnp.zeros(xt_acc.shape, dtype=jnp.float32)

    # Upcast AFTER the DMA so HBM traffic stays in the input dtype; compute in
    # f32 everywhere (v5e VPU/EUP have no bf16 path).
    x = x_ref[...].astype(jnp.float32)            # (tm, tc)
    tgt = tgt_ref[...]                            # (tm, 1) int32

    # Global class index of each column in this chunk.
    # (If VALU ever binds on v7x this iota could be cached in VMEM scratch.)
    col = k * block_c + jax.lax.broadcasted_iota(jnp.int32, x.shape, 1)

    if num_classes % block_c != 0:
        # Partial final class chunk: mask out-of-range columns so garbage does
        # not corrupt the reductions (-inf for max/exp, 0 for the plain sum).
        valid = col < num_classes
        x_red = jnp.where(valid, x, -jnp.inf)
        x_sum = jnp.where(valid, x, 0.0)
    else:
        x_red = x
        x_sum = x

    m_prev = m_acc[...]
    m_new = jnp.maximum(m_prev, jnp.max(x_red, axis=-1, keepdims=True))
    # Rescale the running exp-sum (exp(-inf - m_new) == 0 covers the k == 0
    # init) and add this chunk's contribution.  Only consumer of (x - m).
    se_acc[...] = (se_acc[...] * jnp.exp(m_prev - m_new) +
                   jnp.sum(jnp.exp(x_red - m_new), axis=-1, keepdims=True))
    sx_acc[...] += jnp.sum(x_sum, axis=-1, keepdims=True)
    # gather(dim=-1, index=target) via one-hot select; out-of-range garbage
    # columns can never match a valid target (< num_classes), so no extra mask.
    xt_acc[...] += jnp.sum(jnp.where(col == tgt, x, 0.0), axis=-1, keepdims=True)
    m_acc[...] = m_new

    @pl.when(k == nk - 1)
    def _finalize():
        confidence = 1.0 - smoothing
        lse = jnp.log(se_acc[...]) + m_acc[...]                  # log sum exp(x)
        nll_loss = lse - xt_acc[...]                             # -logprobs[target]
        smooth_loss = lse - sx_acc[...] * (1.0 / num_classes)    # -mean(logprobs)
        loss = confidence * nll_loss + smoothing * smooth_loss
        loss_ref[...] = loss.astype(loss_ref.dtype)


def _default_vmem_limit_bytes() -> int:
    """~75% of physical VMEM: 48 MiB on v7x (64 MiB/TC), 96 MiB on v5e/v6e."""
    try:
        cap = int(pltpu.get_tpu_info().vmem_capacity_bytes)
        if cap <= 0:
            raise ValueError
    except Exception:
        cap = 64 * 1024 * 1024   # conservative (v7x) if the query is unavailable
    return min(96 * 1024 * 1024, (cap * 3) // 4)


def _choose_tiles(n_rows: int, num_classes: int, in_itemsize: int,
                  vmem_limit_bytes: int) -> tuple[int, int]:
    """Pick (tm, tc) from a VMEM budget that accounts for the double-buffered
    native-dtype input window, ~2 live (tm, tc) f32 temporaries, and the
    lane-padded (tm, 1)->(tm, 128) target/output/scratch buffers."""
    budget = (vmem_limit_bytes * 3) // 4            # headroom for compiler scratch
    rows8 = _round_up(max(n_rows, 1), 8)
    # Keep >=2 grid steps along the row axis when N allows, so the "parallel"
    # axis can be sharded across both TensorCores on v7x.
    tm_cap = rows8 if rows8 < 16 else max(8, _round_down(rows8 // 2, 8))

    per_col = 2 * in_itemsize + 2 * 4               # dbl-buffered input + f32 temps
    per_row_small = 8 * 128 * 4                     # lane-padded (tm,1) tgt/out/scratch

    # Preferred: one block over the whole class axis (single-pass logsumexp).
    tm_full = _round_down(budget // (num_classes * per_col + per_row_small), 8)
    if tm_full >= max(8, min(64, tm_cap)):
        return min(tm_full, tm_cap), num_classes

    # Large-C path: split the class axis into lane-aligned chunks and keep the
    # row tile at 128-256 so the kernel is not per-step-overhead bound.
    tm = min(tm_cap, 256)
    tc = _round_down((budget - tm * per_row_small) // (tm * per_col), 128)
    while tc < 128 and tm > 8:
        tm = max(8, _round_down(tm // 2, 8))
        tc = _round_down((budget - tm * per_row_small) // (tm * per_col), 128)
    tc = min(max(tc, 128), _round_up(num_classes, 128))
    return tm, tc


def label_smoothing_cross_entropy(x, target, *, smoothing: float = 0.1,
                                  tm: int | None = None, tc: int | None = None,
                                  vmem_limit_bytes: int | None = None):
    """x: [N, C] float (f32 or bf16), target: [N] int. Returns [N] f32 loss."""
    N, C = x.shape
    in_itemsize = jnp.dtype(x.dtype).itemsize
    if vmem_limit_bytes is None:
        vmem_limit_bytes = _default_vmem_limit_bytes()
    auto_tm, auto_tc = _choose_tiles(N, C, in_itemsize, vmem_limit_bytes)
    if tm is None:
        tm = auto_tm
    if tc is None:
        tc = auto_tc

    target2d = target.reshape(N, 1).astype(jnp.int32)
    grid = (pl.cdiv(N, tm), pl.cdiv(C, tc))

    cost = pl.CostEstimate(
        flops=6 * N * C,
        transcendentals=N * C,
        bytes_accessed=N * C * in_itemsize + N * 4 + N * 4,
    )

    out = pl.pallas_call(
        partial(_lsce_kernel, smoothing=float(smoothing),
                num_classes=C, block_c=tc),
        out_shape=jax.ShapeDtypeStruct((N, 1), jnp.float32),
        grid=grid,
        in_specs=[
            pl.BlockSpec((tm, tc), lambda i, k: (i, k)),   # logits tile
            pl.BlockSpec((tm, 1), lambda i, k: (i, 0)),    # targets tile
        ],
        out_specs=pl.BlockSpec((tm, 1), lambda i, k: (i, 0)),
        scratch_shapes=[pltpu.VMEM((tm, 1), jnp.float32)] * 4,
        compiler_params=pltpu.CompilerParams(
            dimension_semantics=("parallel", "arbitrary"),
            vmem_limit_bytes=int(vmem_limit_bytes),
        ),
        cost_estimate=cost,
    )(x, target2d)
    return out[:, 0]


def _reference(x, target, smoothing=0.1):
    logprobs = jax.nn.log_softmax(x.astype(jnp.float32), axis=-1)
    nll = -jnp.take_along_axis(logprobs, target[:, None], axis=-1)[:, 0]
    smooth = -jnp.mean(logprobs, axis=-1)
    return (1.0 - smoothing) * nll + smoothing * smooth


if __name__ == "__main__":
    key = jax.random.PRNGKey(0)
    kx, kt = jax.random.split(key)

    # Case 1: small shapes; N deliberately not a multiple of 8 to exercise the
    # padless partial-final-row-block path.  Single class chunk (tc = C).
    N, C = 19, 32
    x = jax.random.normal(kx, (N, C), dtype=jnp.float32)
    target = jax.random.randint(kt, (N,), 0, C, dtype=jnp.int32)

    loss = label_smoothing_cross_entropy(x, target, smoothing=0.1)
    loss = jax.block_until_ready(loss)
    ref = _reference(x, target, smoothing=0.1)
    assert loss.shape == (N,)
    assert jnp.allclose(loss, ref, atol=1e-5, rtol=1e-5), (loss, ref)

    # Case 2: force the class-split online-logsumexp path (C % tc != 0 masks
    # the partial last chunk) with bf16 streaming.
    N2, C2 = 24, 300
    x2 = jax.random.normal(kx, (N2, C2), dtype=jnp.bfloat16)
    target2 = jax.random.randint(kt, (N2,), 0, C2, dtype=jnp.int32)

    loss2 = label_smoothing_cross_entropy(x2, target2, smoothing=0.1, tm=8, tc=128)
    loss2 = jax.block_until_ready(loss2)
    ref2 = _reference(x2, target2, smoothing=0.1)
    assert loss2.shape == (N2,)
    assert jnp.allclose(loss2, ref2, atol=1e-3, rtol=1e-3), (loss2, ref2)

    print("KERNEL_OK")
</pallas_src>

<mosaic_0001>
module attributes {stable_mosaic.version = 11 : i64} {
  func.func @_lsce_kernel(%arg0: i32, %arg1: i32, %arg2: memref<8x32xf32, #tpu.memory_space<vmem>>, %arg3: memref<8x1xi32, #tpu.memory_space<vmem>>, %arg4: memref<8x1xf32, #tpu.memory_space<vmem>>, %arg5: memref<8x1xf32, #tpu.memory_space<vmem>>, %arg6: memref<8x1xf32, #tpu.memory_space<vmem>>, %arg7: memref<8x1xf32, #tpu.memory_space<vmem>>, %arg8: memref<8x1xf32, #tpu.memory_space<vmem>>) attributes {dimension_semantics = [#tpu.dimension_semantics<parallel>, #tpu.dimension_semantics<arbitrary>], iteration_bounds = array<i64: 3, 1>, scalar_prefetch = 0 : i64, scratch_operands = 4 : i64, tpu.core_type = #tpu.core_type<tc>, window_params = [{transform_indices = @transform_0, window_bounds = array<i64: 8, 32>}, {transform_indices = @transform_1, window_bounds = array<i64: 8, 1>}, {transform_indices = @transform_2, window_bounds = array<i64: 8, 1>}]} {
    %c0_i32 = arith.constant 0 : i32
    %0 = arith.cmpi eq, %arg1, %c0_i32 : i32
    %1 = arith.extui %0 : i1 to i32
    %c0_i32_0 = arith.constant 0 : i32
    %2 = arith.cmpi ne, %1, %c0_i32_0 : i32
    scf.if %2 {
      %cst_26 = arith.constant 0xFF800000 : f32
      %42 = vector.broadcast %cst_26 : f32 to vector<8x1xf32>
      %c0_27 = arith.constant 0 : index
      %c0_28 = arith.constant 0 : index
      %43 = vector.load %arg5[%c0_27, %c0_28] : memref<8x1xf32, #tpu.memory_space<vmem>>, vector<8x1xf32>
      tpu.vector_store %arg5[%c0_27, %c0_28], %42 {strides = array<i32>} : memref<8x1xf32, #tpu.memory_space<vmem>>, vector<8x1xf32>,
      %cst_29 = arith.constant 0.000000e+00 : f32
      %44 = vector.broadcast %cst_29 : f32 to vector<8x1xf32>
      %c0_30 = arith.constant 0 : index
      %c0_31 = arith.constant 0 : index
      %45 = vector.load %arg6[%c0_30, %c0_31] : memref<8x1xf32, #tpu.memory_space<vmem>>, vector<8x1xf32>
      tpu.vector_store %arg6[%c0_30, %c0_31], %44 {strides = array<i32>} : memref<8x1xf32, #tpu.memory_space<vmem>>, vector<8x1xf32>,
      %cst_32 = arith.constant 0.000000e+00 : f32
      %46 = vector.broadcast %cst_32 : f32 to vector<8x1xf32>
      %c0_33 = arith.constant 0 : index
      %c0_34 = arith.constant 0 : index
      %47 = vector.load %arg7[%c0_33, %c0_34] : memref<8x1xf32, #tpu.memory_space<vmem>>, vector<8x1xf32>
      tpu.vector_store %arg7[%c0_33, %c0_34], %46 {strides = array<i32>} : memref<8x1xf32, #tpu.memory_space<vmem>>, vector<8x1xf32>,
      %cst_35 = arith.constant 0.000000e+00 : f32
      %48 = vector.broadcast %cst_35 : f32 to vector<8x1xf32>
      %c0_36 = arith.constant 0 : index
      %c0_37 = arith.constant 0 : index
      %49 = vector.load %arg8[%c0_36, %c0_37] : memref<8x1xf32, #tpu.memory_space<vmem>>, vector<8x1xf32>
      tpu.vector_store %arg8[%c0_36, %c0_37], %48 {strides = array<i32>} : memref<8x1xf32, #tpu.memory_space<vmem>>, vector<8x1xf32>,
    } else {
    }
    %c0 = arith.constant 0 : index
    %c0_1 = arith.constant 0 : index
    %3 = vector.load %arg2[%c0, %c0_1] : memref<8x32xf32, #tpu.memory_space<vmem>>, vector<8x32xf32>
    %c0_2 = arith.constant 0 : index
    %c0_3 = arith.constant 0 : index
    %4 = vector.load %arg3[%c0_2, %c0_3] : memref<8x1xi32, #tpu.memory_space<vmem>>, vector<8x1xi32>
    %c32_i32 = arith.constant 32 : i32
    %5 = arith.muli %arg1, %c32_i32 : i32
    %6 = tpu.iota {dimensions = array<i32: 1>} : vector<8x32xi32>
    %7 = vector.broadcast %5 : i32 to vector<8x32xi32>
    %8 = arith.addi %7, %6 : vector<8x32xi32>
    %c0_4 = arith.constant 0 : index
    %c0_5 = arith.constant 0 : index
    %9 = vector.load %arg5[%c0_4, %c0_5] : memref<8x1xf32, #tpu.memory_space<vmem>>, vector<8x1xf32>
    %cst = arith.constant dense<0xFF800000> : vector<8xf32>
    %10 = vector.multi_reduction <maximumf>, %3, %cst [1] : vector<8x32xf32> to vector<8xf32>
    %11 = vector.shape_cast %10 : vector<8xf32> to vector<8x1xf32>
    %12 = arith.maximumf %9, %11 : vector<8x1xf32>
    %c0_6 = arith.constant 0 : index
    %c0_7 = arith.constant 0 : index
    %13 = vector.load %arg6[%c0_6, %c0_7] : memref<8x1xf32, #tpu.memory_space<vmem>>, vector<8x1xf32>
    %14 = arith.subf %9, %12 : vector<8x1xf32>
    %15 = math.exp %14 : vector<8x1xf32>
    %16 = arith.mulf %13, %15 : vector<8x1xf32>
    %17 = vector.broadcast %12 : vector<8x1xf32> to vector<8x32xf32>
    %18 = arith.subf %3, %17 : vector<8x32xf32>
    %19 = math.exp %18 : vector<8x32xf32>
    %cst_8 = arith.constant dense<0.000000e+00> : vector<8xf32>
    %20 = vector.multi_reduction <add>, %19, %cst_8 [1] : vector<8x32xf32> to vector<8xf32>
    %21 = vector.shape_cast %20 : vector<8xf32> to vector<8x1xf32>
    %22 = arith.addf %16, %21 : vector<8x1xf32>
    %c0_9 = arith.constant 0 : index
    %c0_10 = arith.constant 0 : index
    %23 = vector.load %arg6[%c0_9, %c0_10] : memref<8x1xf32, #tpu.memory_space<vmem>>, vector<8x1xf32>
    tpu.vector_store %arg6[%c0_9, %c0_10], %22 {strides = array<i32>} : memref<8x1xf32, #tpu.memory_space<vmem>>, vector<8x1xf32>,
    %c0_11 = arith.constant 0 : index
    %c0_12 = arith.constant 0 : index
    %24 = vector.load %arg7[%c0_11, %c0_12] : memref<8x1xf32, #tpu.memory_space<vmem>>, vector<8x1xf32>
    %cst_13 = arith.constant dense<0.000000e+00> : vector<8xf32>
    %25 = vector.multi_reduction <add>, %3, %cst_13 [1] : vector<8x32xf32> to vector<8xf32>
    %26 = vector.shape_cast %25 : vector<8xf32> to vector<8x1xf32>
    %27 = arith.addf %24, %26 : vector<8x1xf32>
    %c0_14 = arith.constant 0 : index
    %c0_15 = arith.constant 0 : index
    %28 = vector.load %arg7[%c0_14, %c0_15] : memref<8x1xf32, #tpu.memory_space<vmem>>, vector<8x1xf32>
    tpu.vector_store %arg7[%c0_14, %c0_15], %27 {strides = array<i32>} : memref<8x1xf32, #tpu.memory_space<vmem>>, vector<8x1xf32>,
    %c0_16 = arith.constant 0 : index
    %c0_17 = arith.constant 0 : index
    %29 = vector.load %arg8[%c0_16, %c0_17] : memref<8x1xf32, #tpu.memory_space<vmem>>, vector<8x1xf32>
    %30 = vector.broadcast %4 : vector<8x1xi32> to vector<8x32xi32>
    %31 = arith.cmpi eq, %8, %30 : vector<8x32xi32>
    %cst_18 = arith.constant 0.000000e+00 : f32
    %32 = vector.broadcast %cst_18 : f32 to vector<8x32xf32>
    %33 = arith.select %31, %3, %32 : vector<8x32xi1>, vector<8x32xf32>
    %cst_19 = arith.constant dense<0.000000e+00> : vector<8xf32>
    %34 = vector.multi_reduction <add>, %33, %cst_19 [1] : vector<8x32xf32> to vector<8xf32>
    %35 = vector.shape_cast %34 : vector<8xf32> to vector<8x1xf32>
    %36 = arith.addf %29, %35 : vector<8x1xf32>
    %c0_20 = arith.constant 0 : index
    %c0_21 = arith.constant 0 : index
    %37 = vector.load %arg8[%c0_20, %c0_21] : memref<8x1xf32, #tpu.memory_space<vmem>>, vector<8x1xf32>
    tpu.vector_store %arg8[%c0_20, %c0_21], %36 {strides = array<i32>} : memref<8x1xf32, #tpu.memory_space<vmem>>, vector<8x1xf32>,
    %c0_22 = arith.constant 0 : index
    %c0_23 = arith.constant 0 : index
    %38 = vector.load %arg5[%c0_22, %c0_23] : memref<8x1xf32, #tpu.memory_space<vmem>>, vector<8x1xf32>
    tpu.vector_store %arg5[%c0_22, %c0_23], %12 {strides = array<i32>} : memref<8x1xf32, #tpu.memory_space<vmem>>, vector<8x1xf32>,
    %c0_i32_24 = arith.constant 0 : i32
    %39 = arith.cmpi eq, %arg1, %c0_i32_24 : i32
    %40 = arith.extui %39 : i1 to i32
    %c0_i32_25 = arith.constant 0 : i32
    %41 = arith.cmpi ne, %40, %c0_i32_25 : i32
    scf.if %41 {
      %c0_26 = arith.constant 0 : index
      %c0_27 = arith.constant 0 : index
      %42 = vector.load %arg6[%c0_26, %c0_27] : memref<8x1xf32, #tpu.memory_space<vmem>>, vector<8x1xf32>
      %43 = math.log %42 : vector<8x1xf32>
      %c0_28 = arith.constant 0 : index
      %c0_29 = arith.constant 0 : index
      %44 = vector.load %arg5[%c0_28, %c0_29] : memref<8x1xf32, #tpu.memory_space<vmem>>, vector<8x1xf32>
      %45 = arith.addf %43, %44 : vector<8x1xf32>
      %c0_30 = arith.constant 0 : index
      %c0_31 = arith.constant 0 : index
      %46 = vector.load %arg8[%c0_30, %c0_31] : memref<8x1xf32, #tpu.memory_space<vmem>>, vector<8x1xf32>
      %47 = arith.subf %45, %46 : vector<8x1xf32>
      %c0_32 = arith.constant 0 : index
      %c0_33 = arith.constant 0 : index
      %48 = vector.load %arg7[%c0_32, %c0_33] : memref<8x1xf32, #tpu.memory_space<vmem>>, vector<8x1xf32>
      %cst_34 = arith.constant 3.125000e-02 : f32
      %49 = vector.broadcast %cst_34 : f32 to vector<8x1xf32>
      %50 = arith.mulf %48, %49 : vector<8x1xf32>
      %51 = arith.subf %45, %50 : vector<8x1xf32>
      %cst_35 = arith.constant 0.899999976 : f32
      %52 = vector.broadcast %cst_35 : f32 to vector<8x1xf32>
      %53 = arith.mulf %52, %47 : vector<8x1xf32>
      %cst_36 = arith.constant 1.000000e-01 : f32
      %54 = vector.broadcast %cst_36 : f32 to vector<8x1xf32>
      %55 = arith.mulf %54, %51 : vector<8x1xf32>
      %56 = arith.addf %53, %55 : vector<8x1xf32>
      %c0_37 = arith.constant 0 : index
      %c0_38 = arith.constant 0 : index
      %57 = vector.load %arg4[%c0_37, %c0_38] : memref<8x1xf32, #tpu.memory_space<vmem>>, vector<8x1xf32>
      tpu.vector_store %arg4[%c0_37, %c0_38], %56 {strides = array<i32>} : memref<8x1xf32, #tpu.memory_space<vmem>>, vector<8x1xf32>,
    } else {
    }
    return
  }
  func.func @transform_0(%arg0: i32, %arg1: i32) -> (i32, i32) {
    %c0_i32 = arith.constant 0 : i32
    return %arg0, %arg1 : i32, i32
  }
  func.func @transform_1(%arg0: i32, %arg1: i32) -> (i32, i32) {
    %c0_i32 = arith.constant 0 : i32
    %c0_i32_0 = arith.constant 0 : i32
    return %arg0, %c0_i32 : i32, i32
  }
  func.func @transform_2(%arg0: i32, %arg1: i32) -> (i32, i32) {
    %c0_i32 = arith.constant 0 : i32
    %c0_i32_0 = arith.constant 0 : i32
    return %arg0, %c0_i32 : i32, i32
  }
}

</mosaic_0001>

<bundles_post_ra>
// kernel: tpu_custom_call.1
= control target key start
LH: loop header
LB: loop body
LE: loop exit
PB: predicated region body
PF: predicated region fallthrough
CT: control target
= control target key end

     0   :  { %s418_s9 = smov 0   ;;  %s420_s10 = smov 0   ;;  %s472_s0 = inlined_call_operand.vmem [shape: f32[19,32], index: 0, kind: input, shape index: {}]   ;;  %s473_s1 = inlined_call_operand.vmem [shape: s32[19,1], index: 1, kind: input, shape index: {}]   ;;  %s474_s2 = inlined_call_operand.vmem [shape: f32[19,1], index: 2, kind: output, shape index: {}]  }
   0x1   :  { %s422_s11 = smov 0  }
   0x2 LB: > { %s24_s12 = sadd.s32 1, %s394_s10  ;;  %p335_p0 = scmp.ge.s32.totalorder %s398_s11, 1  ;;  %s398_s11 = sphi %s422_s11, %s12_s11   ;;  %s394_s10 = sphi %s420_s10, %s476_s10   ;;  %s390_s9 = sphi %s418_s9, %s475_s9  }
   0x3   : > { %p26_p1 = scmp.ge.s32.totalorder %s24_s12, 3  ;;  %p137_p2 = scmp.lt.s32.totalorder %s398_s11, 4 }
   0x5   : > { %s478_s12 = smov (%p26_p1, %s24_s12), 0  ;;  %p138_p3 = pnand %p335_p0, %p137_p2 }
   0x6   : > { %p164_p4 = scmp.lt.s32.totalorder (!%p138_p3), %s390_s9, 2 }
   0x7   : > { %141 = sbr.rel (%p138_p3) target bundleno = 406 (0x196), region = 28 }
   0xc   : > { %vm183_vm0 = vcmask 7168   ;;  %v400_v0 = vmov -inf   ;;  %s480_s9 = smov (!%p164_p4, %s390_s9), 2  ;;  %vm196_vm1 = vcmask 261120   ;;  %v401_v3 = vmov 0  }
   0xd   : > { %184 = vst.msk [vmem:[#allocation2] sm:$0xff] %vm183_vm0, %v400_v0  ;;  %s437_s13 = sshll.u32 %s480_s9, 3  ;;  %368 = vset.pattern.permute.xlu0 %v401_v3  ;;  %369 = vset.pattern.permute.xlu1 %v401_v3  ;;  %v402_v4 = vmov 0.0   ;;  %v191_v11 = vlaneseq }
   0xe   : > { %s170_s16 = scalar_lea.vmem %s472_s0, %s437_s13  ;;  %185 = vst.msk [vmem:[#allocation3] sm:$0xff] %vm183_vm0, %v402_v4  ;;  %s174_s19 = scalar_lea.vmem %s473_s1, %s437_s13 }
   0xf   : > { %v188_v1 = vld [vmem:[%s170_s16] sm:$0xff]  ;;  %186 = vst.msk [vmem:[#allocation4] sm:$0xff] %vm183_vm0, %v402_v4  ;;  %v192_v13 = vand.u32 127, %v191_v11  ;;  %s178_s22 = scalar_lea.vmem %s474_s2, %s437_s13 }
  0x10   : > { %v197_v2 = vsel %vm196_vm1, %v188_v1, -inf  ;;  %187 = vst.msk [vmem:[#allocation5] sm:$0xff] %vm183_vm0, %v402_v4  ;;  %v189_v5 = vld [vmem:[%s174_s19] sm:$0xff]  ;;  %v221_v10 = vsel %vm196_vm1, %v188_v1, 0.0 }
  0x11   : > { %198 = vmax.xlane.f32.xlu0 %v197_v2  ;;  %228 = vperm.xlu1 %369, %v189_v5  }
  0x12   : > { %222 = vadd.xlane.f32.xlu2 %v221_v10 }
  0x14   : > { %v195_v6 = vld [vmem:[#allocation2] sm:$0xff] }
  0x15   : > { %v201_v29 = vld [vmem:[#allocation3] sm:$0xff] }
  0x16   : > { %v220_v21 = vld [vmem:[#allocation4] sm:$0xff] }
  0x17   : > { %v226_v24 = vld [vmem:[#allocation5] sm:$0xff] }
  0x83   : > { %v229_v12 = vpop.permute.xlu1 %228 }
  0x84   : > { %v199_v7 = vpop.xlane.xlu0 %198  ;;  %vm230_vm2 = vcmp.eq.s32.totalorder %v192_v13, %v229_v12 }
  0x85   : > { %v200_v8 = vmax.f32 %v195_v6, %v199_v7  ;;  %v231_v14 = vsel %vm230_vm2, %v188_v1, 0.0  ;;  %v223_v22 = vpop.xlane.xlu2 %222 }
  0x86   : > { %v232_v15 = vsel %vm196_vm1, %v231_v14, 0.0  ;;  %v224_v23 = vadd.f32 %v223_v22, %v220_v21 }
  0x87   : > { %v202_v9 = vsub.f32 %v195_v6, %v200_v8  ;;  %237 = vst.msk [vmem:[#allocation2] sm:$0xff] %vm183_vm0, %v200_v8  ;;  %208 = vperm.xlu0 %368, %v200_v8   ;;  %233 = vadd.xlane.f32.xlu2 %v232_v15 }
  0x88   : > { %225 = vst.msk [vmem:[#allocation4] sm:$0xff] %vm183_vm0, %v224_v23 }
  0x89   : > { %v203_v27 = vmul.f32 1.442695, %v202_v9 }
  0x8e   : > { %v244_v37 = vld [vmem:[#allocation2] sm:$0xff] }
  0x8f   : > { %v248_v35 = vld [vmem:[#allocation4] sm:$0xff] }
  0x90   : > { %v249_v40 = vmul.f32 0.03125, %v248_v35 }
  0xf9   : > { %v209_v16 = vpop.permute.xlu0 %208 }
  0xfa   : > { %v211_v17 = vsub.f32 %v188_v1, %v209_v16  ;;  %v234_v25 = vpop.xlane.xlu2 %233 }
  0xfb   : > { %v235_v26 = vadd.f32 %v234_v25, %v226_v24 }
  0xfc   : > { %v212_v18 = vmul.f32 1.442695, %v211_v17 }
  0xfd   : > { %236 = vst.msk [vmem:[#allocation5] sm:$0xff] %vm183_vm0, %v235_v26 }
  0xfe   : > { %370 = vpow2.f32 %v212_v18 }
  0xff   : > { %372 = vpow2.f32 %v203_v27 }
 0x104   : > { %v371_v19 = vpop.eup %370  ;;  %v246_v38 = vld [vmem:[#allocation5] sm:$0xff] }
 0x105   : > { %v214_v20 = vsel %vm196_vm1, %v371_v19, 0.0  ;;  %v373_v28 = vpop.eup %372 }
 0x106   : > { %215 = vadd.xlane.f32.xlu1 %v214_v20  ;;  %v205_v30 = vmul.f32 %v373_v28, %v201_v29 }
 0x179   : > { %v216_v31 = vpop.xlane.xlu1 %215 }
 0x17a   : > { %v217_v32 = vadd.f32 %v216_v31, %v205_v30 }
 0x17c   : > { %219 = vst.msk [vmem:[#allocation3] sm:$0xff] %vm183_vm0, %v217_v32 }
 0x183   : > { %v241_v33 = vld [vmem:[#allocation3] sm:$0xff] }
 0x184   : > { %374 = vlog2.f32 %v241_v33 }
 0x18a   : > { %v375_v34 = vpop.eup %374 }
 0x18b   : > { %v243_v36 = vmul.f32 0.6931472, %v375_v34 }
 0x18d   : > { %v245_v39 = vadd.f32 %v244_v37, %v243_v36 }
 0x18f   : > { %v250_v41 = vsub.f32 %v245_v39, %v249_v40  ;;  %v247_v42 = vsub.f32 %v245_v39, %v246_v38 }
 0x191   : > { %v252_v43 = vmul.f32 0.1, %v250_v41  ;;  %v251_v44 = vmul.f32 0.9, %v247_v42 }
 0x193   : > { %v253_v45 = vadd.f32 %v252_v43, %v251_v44 }
 0x195   : > { %254 = vst.msk [vmem:[%s178_s22] sm:$0xff] %vm183_vm0, %v253_v45 }
 0x196 PF: > { %s12_s11 = sadd.s32 1, %s398_s11   ;;  %s475_s9 = smov %s394_s10 }
 0x197   : > { %p9_p5 = scmp.ge.s32.totalorder %s12_s11, 5   ;;  %s476_s10 = smov %s478_s12 }
 0x199   :  { %11 = sbr.rel (!%p9_p5) target bundleno = 2 (0x2), region = 69 }

</bundles_post_ra>
